<compile_context>
chip_gen: v7x
topology: tpu7x:2x2x1
jax: 0.10.0
libtpu: 0.0.40
codegen_flags: <defaults>
</compile_context>

<pallas_src>
import jax
import jax.numpy as jnp
from jax import lax
from jax.experimental import pallas as pl
from jax.experimental.pallas import tpu as pltpu


def _pointwise_kernel(w_ref, x_ref, o_ref):
    # w_ref: (Cin, Cout)     -- VMEM-resident across the whole grid.
    # x_ref: (nb, Cin, T)    -- nb batch rows, all channels, lane-dense spatial tile.
    # o_ref: (nb, Cout, T)   -- lane-dense spatial tile of the output.
    w = w_ref[...]
    for b in range(x_ref.shape[0]):  # static, short unrolled loop over folded batch
        o_ref[b] = lax.dot_general(
            w,
            x_ref[b],
            dimension_numbers=(((0,), (0,)), ((), ())),  # contract Cin of both
            preferred_element_type=jnp.float32,
        ).astype(o_ref.dtype)


def _round_up(x, m):
    return ((x + m - 1) // m) * m


def _vmem_capacity_bytes():
    try:
        return int(pltpu.get_tpu_info().vmem_capacity_bytes)
    except Exception:
        return 128 << 20  # assume v5e/v6e-class if the query is unavailable


def _plan(n, cin, cout, hw, itemsize):
    """Choose (nb, tile, hw_steps, weight_buffers, vmem_limit_bytes) so the
    pipelined blocks fit VMEM on every generation (v7x 64 MiB, v5e/v6e 128 MiB)."""
    vmem_cap = _vmem_capacity_bytes()
    small_vmem = vmem_cap <= (64 << 20)            # v7x-class
    budget = (24 << 20) if small_vmem else (48 << 20)

    cin_pad = _round_up(cin, 8)
    cout_pad = _round_up(cout, 8)
    w_bytes = cin_pad * _round_up(cout, 128) * itemsize
    w_bufs = 1 if w_bytes >= (2 << 20) else 2      # big constant weight: single buffer
    lane_bytes = (cin_pad + cout_pad) * itemsize   # x+out bytes per (batch row, lane)
    block_budget = max(budget - w_bufs * w_bytes, 2 * 2 * lane_bytes * 128)

    # --- spatial tile: largest multiple of 128 fitting the (double-buffered) budget.
    hw_ceil = _round_up(hw, 128)
    tile = max(128, (block_budget // (2 * lane_bytes)) // 128 * 128)
    tile = min(tile, hw_ceil)
    # Prefer an exact divisor of hw (no masked tail) if it costs < 2x the tile size.
    t = tile
    while t >= 128:
        if hw % t == 0:
            break
        t -= 128
    if t >= 128 and 2 * t >= tile:
        tile = t
    # Keep the HW axis from collapsing to 1-2 steps when hw is large enough.
    while pl.cdiv(hw, tile) < 4 and tile > 128 and hw_ceil >= 4 * 128:
        tile = max(128, (tile // 2) // 128 * 128)
    hw_steps = pl.cdiv(hw, tile)

    # --- fold batch rows into the block while per-step DMA is tiny (<~1 MiB).
    nb = 1
    step_bytes = lane_bytes * tile
    while (
        nb < n
        and n % (2 * nb) == 0
        and step_bytes * (2 * nb) < (1 << 20)
        and 2 * step_bytes * (2 * nb) <= block_budget
    ):
        nb *= 2

    live = 2 * step_bytes * nb + w_bufs * w_bytes
    vmem_limit = int(min(vmem_cap * 3 // 4, max(32 << 20, live + (8 << 20))))
    return nb, tile, hw_steps, w_bufs, vmem_limit


def pointwise_conv2d(x_nchw, weight, *, cast_to_bf16=False):
    """x_nchw: (N, Cin, H, W), weight: (Cin, Cout) -> (N, Cout, H, W)."""
    n, cin, h, w = x_nchw.shape
    cin_w, cout = weight.shape
    assert cin == cin_w

    hw = h * w
    x_flat = x_nchw.reshape(n, cin, hw)  # contiguous -> no data movement

    if cast_to_bf16:
        # Halves HBM traffic for this memory-bound op; MXU still accumulates f32.
        x_flat = x_flat.astype(jnp.bfloat16)
        weight = weight.astype(jnp.bfloat16)
    out_dtype = x_flat.dtype
    itemsize = jnp.dtype(x_flat.dtype).itemsize

    nb, tile, hw_steps, w_bufs, vmem_limit = _plan(n, cin, cout, hw, itemsize)
    grid = (n // nb, hw_steps)

    cost = pl.CostEstimate(
        flops=2 * n * hw * cin * cout,
        transcendentals=0,
        bytes_accessed=int(
            n * cin * hw * itemsize        # read x
            + n * cout * hw * itemsize     # write out
            + cin * cout * itemsize        # read weight
        ),
    )

    # Weight: constant index_map -> stays VMEM-resident; skip the second buffer
    # when the weight is large (it would waste VMEM that the spatial tile needs).
    w_spec_kwargs = {}
    if w_bufs == 1:
        w_spec_kwargs["pipeline_mode"] = pl.Buffered(1)
    w_spec = pl.BlockSpec((cin, cout), lambda b, s: (0, 0), **w_spec_kwargs)

    out_flat = pl.pallas_call(
        _pointwise_kernel,
        out_shape=jax.ShapeDtypeStruct((n, cout, hw), out_dtype),
        grid_spec=pltpu.PrefetchScalarGridSpec(
            num_scalar_prefetch=0,
            grid=grid,
            in_specs=[
                w_spec,
                # x: nb batch rows, all channels, a lane-dense spatial tile.
                pl.BlockSpec((nb, cin, tile), lambda b, s: (b, 0, s)),
            ],
            out_specs=pl.BlockSpec((nb, cout, tile), lambda b, s: (b, 0, s)),
        ),
        compiler_params=pltpu.CompilerParams(
            dimension_semantics=("parallel", "parallel"),
            vmem_limit_bytes=vmem_limit,
        ),
        cost_estimate=cost,
    )(weight, x_flat)

    return out_flat.reshape(n, cout, h, w)


def orthogonal_init(key, in_channels, out_channels, dtype=jnp.float32):
    """Deterministic orthogonal init mimicking nn.init.orthogonal_ on a
    (in_channels, out_channels) matrix."""
    rows, cols = in_channels, out_channels
    flat = jax.random.normal(key, (max(rows, cols), min(rows, cols)), dtype)
    q, r = jnp.linalg.qr(flat)
    d = jnp.sign(jnp.diagonal(r))
    d = jnp.where(d == 0, jnp.ones_like(d), d)  # guard against zero diagonal
    q = q * d[None, :]
    if rows < cols:
        q = q.T
    return q[:rows, :cols].astype(dtype)


if __name__ == "__main__":
    key = jax.random.PRNGKey(0)
    k_x, k_w = jax.random.split(key)

    # Small shapes consistent with the module: batch=2, in=4, out=8, spatial=16x16.
    N, Cin, Cout, H, W = 2, 4, 8, 16, 16

    x = jax.random.normal(k_x, (N, Cin, H, W), jnp.float32)
    weight = orthogonal_init(k_w, Cin, Cout)  # (in_channels, out_channels)

    out = pointwise_conv2d(x, weight)
    out = jax.block_until_ready(out)

    # Reference: out[n,o,h,w] = sum_i x[n,i,h,w] * weight[i,o]
    ref = jnp.einsum("nihw,io->nohw", x, weight)
    assert out.shape == (N, Cout, H, W)
    assert jnp.allclose(out, ref, atol=1e-5, rtol=1e-5)

    print("KERNEL_OK")
</pallas_src>

<mosaic_0001>
module attributes {stable_mosaic.version = 11 : i64} {
  func.func @_pointwise_kernel(%arg0: i32, %arg1: i32, %arg2: memref<4x8xf32, #tpu.memory_space<vmem>>, %arg3: memref<2x4x256xf32, #tpu.memory_space<vmem>>, %arg4: memref<2x8x256xf32, #tpu.memory_space<vmem>>) attributes {dimension_semantics = [#tpu.dimension_semantics<parallel>, #tpu.dimension_semantics<parallel>], iteration_bounds = array<i64: 1, 1>, scalar_prefetch = 0 : i64, scratch_operands = 0 : i64, tpu.core_type = #tpu.core_type<tc>, window_params = [{pipeline_mode = #tpu.pipeline_mode<synchronous>, transform_indices = @transform_0, window_bounds = array<i64: 4, 8>}, {transform_indices = @transform_1, window_bounds = array<i64: 2, 4, 256>}, {transform_indices = @transform_2, window_bounds = array<i64: 2, 8, 256>}]} {
    %c0 = arith.constant 0 : index
    %c0_0 = arith.constant 0 : index
    %0 = vector.load %arg2[%c0, %c0_0] : memref<4x8xf32, #tpu.memory_space<vmem>>, vector<4x8xf32>
    %c0_1 = arith.constant 0 : index
    %c0_2 = arith.constant 0 : index
    %c0_3 = arith.constant 0 : index
    %1 = vector.load %arg3[%c0_1, %c0_2, %c0_3] : memref<2x4x256xf32, #tpu.memory_space<vmem>>, vector<1x4x256xf32>
    %2 = vector.shape_cast %1 : vector<1x4x256xf32> to vector<4x256xf32>
    %cst = arith.constant dense<0.000000e+00> : vector<8x256xf32>
    %3 = tpu.matmul %0, %2, %cst {dimension_numbers = #tpu.dot_dimension_numbers<[0], [0], [1], [1], [0, 1, 1, 1], [], []>} : vector<4x8xf32>, vector<4x256xf32>, vector<8x256xf32> -> vector<8x256xf32>
    %c0_4 = arith.constant 0 : index
    %c0_5 = arith.constant 0 : index
    %c0_6 = arith.constant 0 : index
    %4 = vector.load %arg4[%c0_4, %c0_5, %c0_6] : memref<2x8x256xf32, #tpu.memory_space<vmem>>, vector<1x8x256xf32>
    %5 = vector.shape_cast %4 : vector<1x8x256xf32> to vector<8x256xf32>
    %6 = vector.shape_cast %3 : vector<8x256xf32> to vector<1x8x256xf32>
    tpu.vector_store %arg4[%c0_4, %c0_5, %c0_6], %6 {strides = array<i32>} : memref<2x8x256xf32, #tpu.memory_space<vmem>>, vector<1x8x256xf32>,
    %c1 = arith.constant 1 : index
    %c0_7 = arith.constant 0 : index
    %c0_8 = arith.constant 0 : index
    %7 = vector.load %arg3[%c1, %c0_7, %c0_8] : memref<2x4x256xf32, #tpu.memory_space<vmem>>, vector<1x4x256xf32>
    %8 = vector.shape_cast %7 : vector<1x4x256xf32> to vector<4x256xf32>
    %cst_9 = arith.constant dense<0.000000e+00> : vector<8x256xf32>
    %9 = tpu.matmul %0, %8, %cst_9 {dimension_numbers = #tpu.dot_dimension_numbers<[0], [0], [1], [1], [0, 1, 1, 1], [], []>} : vector<4x8xf32>, vector<4x256xf32>, vector<8x256xf32> -> vector<8x256xf32>
    %c1_10 = arith.constant 1 : index
    %c0_11 = arith.constant 0 : index
    %c0_12 = arith.constant 0 : index
    %10 = vector.load %arg4[%c1_10, %c0_11, %c0_12] : memref<2x8x256xf32, #tpu.memory_space<vmem>>, vector<1x8x256xf32>
    %11 = vector.shape_cast %10 : vector<1x8x256xf32> to vector<8x256xf32>
    %12 = vector.shape_cast %9 : vector<8x256xf32> to vector<1x8x256xf32>
    tpu.vector_store %arg4[%c1_10, %c0_11, %c0_12], %12 {strides = array<i32>} : memref<2x8x256xf32, #tpu.memory_space<vmem>>, vector<1x8x256xf32>,
    return
  }
  func.func @transform_0(%arg0: i32, %arg1: i32) -> (i32, i32) {
    %c0_i32 = arith.constant 0 : i32
    %c0_i32_0 = arith.constant 0 : i32
    %c0_i32_1 = arith.constant 0 : i32
    return %c0_i32, %c0_i32_0 : i32, i32
  }
  func.func @transform_1(%arg0: i32, %arg1: i32) -> (i32, i32, i32) {
    %c0_i32 = arith.constant 0 : i32
    %c0_i32_0 = arith.constant 0 : i32
    return %arg0, %c0_i32, %arg1 : i32, i32, i32
  }
  func.func @transform_2(%arg0: i32, %arg1: i32) -> (i32, i32, i32) {
    %c0_i32 = arith.constant 0 : i32
    %c0_i32_0 = arith.constant 0 : i32
    return %arg0, %c0_i32, %arg1 : i32, i32, i32
  }
}

</mosaic_0001>

<bundles_post_ra>
// kernel: tpu_custom_call.1
= control target key start
LH: loop header
LB: loop body
LE: loop exit
PB: predicated region body
PF: predicated region fallthrough
CT: control target
= control target key end

     0   :  { %7 = vsyncpa [#allocation3], 0  ;;  %s410_s0 = inlined_call_operand.hbm [shape: f32[4,8], index: 0, kind: input, shape index: {}]   ;;  %s411_s1 = inlined_call_operand.hbm [shape: f32[2,4,256], index: 1, kind: input, shape index: {}]   ;;  %s412_s2 = inlined_call_operand.hbm [shape: f32[2,8,256], index: 2, kind: output, shape index: {}]  }
   0x1   :  { %8 = vsyncpa [#allocation6], 0 }
   0x2   :  { %9 = vsyncpa [#allocation4], 0  ;;  %s344_s9 = smov [#allocation2]   ;;  %s345_s11 = smov [#allocation5]  }
   0x3   :  { %s16_s10 = sshll.u32 %s344_s9, 4  ;;  %s25_s12 = sshll.u32 %s345_s11, 4  ;;  %s17_s10 = int_to_ptr.vmem [resolvable:$true] %s16_s10  ;;  %s367_s12 = int_to_ptr.vmem [resolvable:$true] %s25_s12 }
   0x4   :  { %s272_s15 = scalar_lea.hbm %s410_s0, 64 }
   0x5   :  { %p273_p0 = scmp.ne.s32.totalorder %s410_s0, %s272_s15  ;;  %p276_p1 = scmp.lt.u32.totalorder %s272_s15, %s410_s0 }
   0x7   :  { %p278_p2 = pnand %p276_p1, %p273_p0 }
   0x9   :  { %281 = shalt.err (!%p278_p2)
}
   0xa   :  { %s282_s20 = scalar_lea.vmem %s17_s10, 64  ;;  %p287_p4 = scmp.lt.s32.totalorder %s17_s10, %s17_s10 }
   0xb   :  { %p283_p3 = scmp.ne.s32.totalorder %s17_s10, %s282_s20  ;;  %p288_p5 = scmp.lt.s32.totalorder %s282_s20, %s282_s20 }
   0xd   :  { %p289_p6 = por %p288_p5, %p287_p4 }
   0xf   :  { %p290_p7 = pnand %p289_p6, %p283_p3 }
  0x11   :  { %293 = shalt.err (!%p290_p7)
}
  0x12   :  { %19 = dma.hbm_to_vmem [thread:$0]  %s410_s0, 64, %s17_s10, [#allocation3]  }
  0x13   :  { %s294_s25 = scalar_lea.hbm %s411_s1, 256 }
  0x14   :  { %p295_p8 = scmp.ne.s32.totalorder %s411_s1, %s294_s25  ;;  %p298_p9 = scmp.lt.u32.totalorder %s294_s25, %s411_s1 }
  0x16   :  { %p300_p10 = pnand %p298_p9, %p295_p8 }
  0x18   :  { %303 = shalt.err (!%p300_p10)
}
  0x19   :  { %s304_s30 = scalar_lea.vmem %s367_s12, 256  ;;  %p309_p12 = scmp.lt.s32.totalorder %s367_s12, %s367_s12 }
  0x1a   :  { %p305_p11 = scmp.ne.s32.totalorder %s367_s12, %s304_s30  ;;  %p310_p13 = scmp.lt.s32.totalorder %s304_s30, %s304_s30 }
  0x1c   :  { %p311_p0 = por %p310_p13, %p309_p12 }
  0x1e   :  { %p312_p1 = pnand %p311_p0, %p305_p11 }
  0x20   :  { %315 = shalt.err (!%p312_p1)
}
  0x21   :  { %s346_s0 = smov 128   ;;  %s347_s3 = smov 8  }
  0x22   :  { %31 = dma.hbm_to_vmem [thread:$0]  %s411_s1, 256, %s367_s12, [#allocation6], %s346_s0, %s346_s0, %s347_s3  }
  0x23   :  { %338 = dma.done.wait [#allocation3], 64  }
  0x24   :  { %339 = vsyncadd [#allocation3], 4294967232 }
  0x25   :  { %340 = dma.done.wait [#allocation6], 256  }
  0x26   :  { %341 = vsyncadd [#allocation6], 4294967040  ;;  %v348_v0 = vmov 0.0   ;;  %v38_v1 = vld [vmem:[#allocation2] sm:$0xf]  ;;  %v39_v2 = vld [vmem:[#allocation5] sm:$0xff] }
  0x27   :  { %147 = vmatprep.mubr.f32.mxu0 %v348_v0  ;;  %228 = vmatprep.mubr.f32.mxu1 %v348_v0  ;;  %vm78_vm0 = vcmask 1043456   ;;  %v157_v3 = vld [vmem:[#allocation5 + $0x8] sm:$0xff]  ;;  %v73_v4 = vcombine.high %v39_v2, %v39_v2  ;;  %vm74_vm1 = vcmask 31744   ;;  %s349_s1 = smov [#allocation7]  }
  0x28   :  { %40 = vxpose.xlu0.b32.start.end [1/1] (short) (narrow) %v38_v1, 8  ;;  %v159_v5 = vcombine.high %v157_v3, %v157_v3  ;;  %s243_s6 = sshll.u32 %s349_s1, 4  ;;  %s244_s6 = int_to_ptr.vmem [resolvable:$true] %s243_s6 }
  0x29   :  { %256 = vmatprep.subr.msk.mxu0 %vm78_vm0, %v73_v4  ;;  %s316_s7 = scalar_lea.vmem %s244_s6, 512  ;;  %p321_p3 = scmp.lt.s32.totalorder %s244_s6, %s244_s6 }
  0x2a   :  { %259 = vmatprep.subr.msk.mxu1 %vm78_vm0, %v159_v5  ;;  %257 = vmatpush1.msk.msra.mxu0 %vm78_vm0, %v39_v2  ;;  %p317_p2 = scmp.ne.s32.totalorder %s244_s6, %s316_s7  ;;  %p322_p4 = scmp.lt.s32.totalorder %s316_s7, %s316_s7 }
  0x2b   :  { %260 = vmatpush1.msk.msra.mxu1 %vm78_vm0, %v157_v3 }
  0x2c   :  { %p323_p5 = por %p322_p4, %p321_p3 }
  0x2e   :  { %p324_p6 = pnand %p323_p5, %p317_p2 }
  0xa8   :  { %v56_v6 = vpop.trf.xlu0 }
  0xa9   :  { %258 = vmatmul.mubr.msk.f32.vlgmr.msra.gmra.mrb[0].mxu0 %vm74_vm1, %v56_v6  ;;  %261 = vmatmul.mubr.msk.f32.vlgmr.msra.gmra.mrb[0].mxu1 %vm74_vm1, %v56_v6 }
 0x17c   :  { %v149_v7 = vpop.f32.mrb[0].mxu0  ;;  %v230_v8 = vpop.f32.mrb[0].mxu1 }
 0x17d   :  { %154 = vst [vmem:[#allocation7] sm:$0xff] %v149_v7  ;;  %236 = vst [vmem:[#allocation7 + $0x10] sm:$0xff] %v230_v8  ;;  %v151_v9 = vpop.f32.mrb[1].mxu0  ;;  %v232_v10 = vpop.f32.mrb[1].mxu1 }
 0x17e   :  { %155 = vst [vmem:[#allocation7 + $0x8] sm:$0xff] %v151_v9  ;;  %237 = vst [vmem:[#allocation7 + $0x18] sm:$0xff] %v232_v10 }
 0x17f   :  { %327 = shalt.err (!%p324_p6)
}
 0x180   :  { %s328_s10 = scalar_lea.hbm %s412_s2, 512 }
 0x181   :  { %p329_p7 = scmp.ne.s32.totalorder %s412_s2, %s328_s10  ;;  %p332_p8 = scmp.lt.u32.totalorder %s328_s10, %s412_s2 }
 0x183   :  { %p334_p9 = pnand %p332_p8, %p329_p7 }
 0x185   :  { %337 = shalt.err (!%p334_p9)
}
 0x186   :  { %s350_s15 = smov 256   ;;  %s351_s16 = smov 16  }
 0x187   :  { %249 = dma.vmem_to_hbm [thread:$0]  %s244_s6, 512, %s412_s2, [#allocation4], %s350_s15, %s350_s15, %s351_s16  }
 0x188   :  { %342 = dma.done.wait [#allocation4], 512  }
 0x189   :  { %343 = vsyncadd [#allocation4], 4294966784 }
 0x18a   :  { %253 = vsyncpa [#allocation3], 1 }
 0x18b   :  { %254 = vsyncpa [#allocation6], 1 }
 0x18c   :  { %255 = vsyncpa [#allocation4], 1 }

</bundles_post_ra>
